<compile_context>
chip_gen: v6e
topology: v6e:2x2x1
jax: 0.10.0
libtpu: 0.0.40
codegen_flags: <defaults>
</compile_context>

<pallas_src>
import functools

import jax
import jax.numpy as jnp
from jax.experimental import pallas as pl
from jax.experimental.pallas import tpu as pltpu

NEG_SLOPE = 0.2
N_LAYERS = 7
DIM_PAD = 128          # lane width; >= widest layer (embed_dim * 4 = 128)


def _layer_dims(embed_dim, out_dim):
    return [embed_dim, embed_dim * 2, embed_dim * 4, embed_dim * 2,
            embed_dim * 2, embed_dim, embed_dim // 2, out_dim]


def make_params(embed_dim, out_dim, key):
    """Deterministic synthetic parameters matching the nn.Sequential shapes."""
    dims = _layer_dims(embed_dim, out_dim)
    params = []
    for i in range(N_LAYERS):
        key, wk, bk = jax.random.split(key, 3)
        bound = 1.0 / float(dims[i]) ** 0.5
        w = jax.random.uniform(wk, (dims[i], dims[i + 1]),
                               minval=-bound, maxval=bound, dtype=jnp.float32)
        b = jax.random.uniform(bk, (dims[i + 1],),
                               minval=-bound, maxval=bound, dtype=jnp.float32)
        params.append((w, b))
    return params


def pack_params(params):
    """Pack 7 (w, b) pairs into one zero-padded bf16 weight cube + f32 bias mat."""
    w_packed = jnp.zeros((N_LAYERS, DIM_PAD, DIM_PAD), jnp.bfloat16)
    b_packed = jnp.zeros((N_LAYERS, DIM_PAD), jnp.float32)
    for l, (w, b) in enumerate(params):
        w_packed = w_packed.at[l, :w.shape[0], :w.shape[1]].set(
            w.astype(jnp.bfloat16))
        b_packed = b_packed.at[l, :b.shape[-1]].set(b.astype(jnp.float32))
    return w_packed, b_packed


def _make_kernel(batch, out_dim, tile_b):
    def kernel(x_ref, w_ref, b_ref, lab_ref, out_ref):
        # x_ref: (tile_b, 128) f32, zero-padded feature columns.
        h = x_ref[...].astype(jnp.float32)

        scores = None
        for l in range(N_LAYERS):
            # bf16 MXU operands, f32 accumulation; bias add in f32.
            z = jnp.dot(h.astype(jnp.bfloat16), w_ref[l],
                        preferred_element_type=jnp.float32) + b_ref[l, :]
            if l < N_LAYERS - 1:
                h = jnp.where(z > 0, z, NEG_SLOPE * z)   # LeakyReLU(0.2)
                # Dropout(p=0.3): identity in eval mode.
                # TODO(synk): training-mode dropout needs pltpu PRNG bits.
            else:
                scores = z                               # (tile_b, 128), cols>=C are 0

        col_ids = jax.lax.broadcasted_iota(jnp.int32, (tile_b, DIM_PAD), 1)

        # Fused log_softmax + NLL:  nll_i = lse_i - scores[i, label_i]
        onehot = (col_ids == lab_ref[...]).astype(jnp.float32)       # (tile_b, 128)
        picked = jnp.sum(scores * onehot, axis=1, keepdims=True)     # (tile_b, 1)

        masked = jnp.where(col_ids < out_dim, scores, -1e30)         # mask pad classes
        m = jnp.max(masked, axis=1, keepdims=True)
        lse = m + jnp.log(jnp.sum(jnp.exp(masked - m), axis=1, keepdims=True))

        # Mask padded rows of a partial last batch tile.
        row_ids = (jax.lax.broadcasted_iota(jnp.int32, (tile_b, 1), 0)
                   + pl.program_id(0) * tile_b)
        nll = jnp.where(row_ids < batch, lse - picked, 0.0)

        out_ref[0, 0] = jnp.sum(nll)                                  # partial sum (SMEM)
    return kernel


@functools.partial(jax.jit, static_argnames=("out_dim",))
def discriminator_loss(filter_embed, attr_label, w_packed, b_packed, *, out_dim):
    batch, embed_dim = filter_embed.shape
    tile_b = batch if batch <= 128 else 128
    grid_b = pl.cdiv(batch, tile_b)

    x_pad = jnp.pad(filter_embed.astype(jnp.float32),
                    ((0, 0), (0, DIM_PAD - embed_dim)))
    labels = attr_label.reshape(batch, 1).astype(jnp.int32)

    dims = _layer_dims(embed_dim, out_dim)
    flops = 2 * batch * sum(dims[i] * dims[i + 1] for i in range(N_LAYERS))
    bytes_accessed = (w_packed.size * 2 + b_packed.size * 4
                      + x_pad.size * 4 + batch * 4 + grid_b * 4)
    cost = pl.CostEstimate(flops=int(flops),
                           transcendentals=int(batch * out_dim),
                           bytes_accessed=int(bytes_accessed))

    kernel = _make_kernel(batch, out_dim, tile_b)
    partial_sums = pl.pallas_call(
        kernel,
        out_shape=jax.ShapeDtypeStruct((grid_b, 1), jnp.float32),
        grid=(grid_b,),
        in_specs=[
            pl.BlockSpec((tile_b, DIM_PAD), lambda i: (i, 0)),
            pl.BlockSpec((N_LAYERS, DIM_PAD, DIM_PAD), lambda i: (0, 0, 0)),
            pl.BlockSpec((N_LAYERS, DIM_PAD), lambda i: (0, 0)),
            pl.BlockSpec((tile_b, 1), lambda i: (i, 0)),
        ],
        out_specs=pl.BlockSpec((1, 1), lambda i: (i, 0),
                               memory_space=pltpu.MemorySpace.SMEM),
        compiler_params=pltpu.CompilerParams(
            dimension_semantics=("parallel",)),
        cost_estimate=cost,
    )(x_pad, w_packed, b_packed, labels)

    return jnp.sum(partial_sums) / batch


if __name__ == "__main__":
    EMBED_DIM = 32          # args.embed_size
    OUT_DIM = 4             # torch.max(tag) + 1
    BATCH = 8

    key = jax.random.PRNGKey(0)
    k_x, k_lab, k_par = jax.random.split(key, 3)

    filter_embed = jax.random.normal(k_x, (BATCH, EMBED_DIM), dtype=jnp.float32)
    attr_label = jax.random.randint(k_lab, (BATCH,), 0, OUT_DIM, dtype=jnp.int32)

    params = make_params(EMBED_DIM, OUT_DIM, k_par)
    w_packed, b_packed = pack_params(params)

    loss = discriminator_loss(filter_embed, attr_label, w_packed, b_packed,
                              out_dim=OUT_DIM)
    jax.block_until_ready(loss)

    assert loss.shape == () and bool(jnp.isfinite(loss))
    print("KERNEL_OK")
</pallas_src>

<mosaic_0001>
module attributes {stable_mosaic.version = 11 : i64} {
  func.func @kernel(%arg0: i32, %arg1: memref<8x128xf32, #tpu.memory_space<vmem>>, %arg2: memref<7x128x128xbf16, #tpu.memory_space<vmem>>, %arg3: memref<7x128xf32, #tpu.memory_space<vmem>>, %arg4: memref<8x1xi32, #tpu.memory_space<vmem>>, %arg5: memref<1x1xf32, #tpu.memory_space<smem>>) attributes {dimension_semantics = [#tpu.dimension_semantics<parallel>], iteration_bounds = array<i64: 1>, scalar_prefetch = 0 : i64, scratch_operands = 0 : i64, tpu.core_type = #tpu.core_type<tc>, window_params = [{transform_indices = @transform_0, window_bounds = array<i64: 8, 128>}, {pipeline_mode = #tpu.pipeline_mode<synchronous>, transform_indices = @transform_1, window_bounds = array<i64: 7, 128, 128>}, {pipeline_mode = #tpu.pipeline_mode<synchronous>, transform_indices = @transform_2, window_bounds = array<i64: 7, 128>}, {transform_indices = @transform_3, window_bounds = array<i64: 8, 1>}, {transform_indices = @transform_4, window_bounds = array<i64: 1, 1>}]} {
    %c0 = arith.constant 0 : index
    %c0_0 = arith.constant 0 : index
    %0 = vector.load %arg1[%c0, %c0_0] : memref<8x128xf32, #tpu.memory_space<vmem>>, vector<8x128xf32>
    %1 = arith.truncf %0 : vector<8x128xf32> to vector<8x128xbf16>
    %c0_1 = arith.constant 0 : index
    %c0_2 = arith.constant 0 : index
    %c0_3 = arith.constant 0 : index
    %2 = vector.load %arg2[%c0_1, %c0_2, %c0_3] : memref<7x128x128xbf16, #tpu.memory_space<vmem>>, vector<1x128x128xbf16>
    %3 = vector.shape_cast %2 : vector<1x128x128xbf16> to vector<128x128xbf16>
    %cst = arith.constant dense<0.000000e+00> : vector<8x128xf32>
    %4 = tpu.matmul %1, %3, %cst {dimension_numbers = #tpu.dot_dimension_numbers<[1], [0], [0], [1], [0, 0, 1, 1], [], []>} : vector<8x128xbf16>, vector<128x128xbf16>, vector<8x128xf32> -> vector<8x128xf32>
    %c0_4 = arith.constant 0 : index
    %c0_5 = arith.constant 0 : index
    %5 = vector.load %arg3[%c0_4, %c0_5] : memref<7x128xf32, #tpu.memory_space<vmem>>, vector<1x128xf32>
    %6 = vector.shape_cast %5 : vector<1x128xf32> to vector<128xf32>
    %7 = vector.shape_cast %6 : vector<128xf32> to vector<1x128xf32>
    %8 = vector.broadcast %7 : vector<1x128xf32> to vector<8x128xf32>
    %9 = arith.addf %4, %8 : vector<8x128xf32>
    %cst_6 = arith.constant 0.000000e+00 : f32
    %10 = vector.broadcast %cst_6 : f32 to vector<8x128xf32>
    %11 = arith.cmpf ogt, %9, %10 : vector<8x128xf32>
    %cst_7 = arith.constant 2.000000e-01 : f32
    %12 = vector.broadcast %cst_7 : f32 to vector<8x128xf32>
    %13 = arith.mulf %12, %9 : vector<8x128xf32>
    %14 = arith.select %11, %9, %13 : vector<8x128xi1>, vector<8x128xf32>
    %15 = arith.truncf %14 : vector<8x128xf32> to vector<8x128xbf16>
    %c1 = arith.constant 1 : index
    %c0_8 = arith.constant 0 : index
    %c0_9 = arith.constant 0 : index
    %16 = vector.load %arg2[%c1, %c0_8, %c0_9] : memref<7x128x128xbf16, #tpu.memory_space<vmem>>, vector<1x128x128xbf16>
    %17 = vector.shape_cast %16 : vector<1x128x128xbf16> to vector<128x128xbf16>
    %cst_10 = arith.constant dense<0.000000e+00> : vector<8x128xf32>
    %18 = tpu.matmul %15, %17, %cst_10 {dimension_numbers = #tpu.dot_dimension_numbers<[1], [0], [0], [1], [0, 0, 1, 1], [], []>} : vector<8x128xbf16>, vector<128x128xbf16>, vector<8x128xf32> -> vector<8x128xf32>
    %c1_11 = arith.constant 1 : index
    %c0_12 = arith.constant 0 : index
    %19 = vector.load %arg3[%c1_11, %c0_12] : memref<7x128xf32, #tpu.memory_space<vmem>>, vector<1x128xf32>
    %20 = vector.shape_cast %19 : vector<1x128xf32> to vector<128xf32>
    %21 = vector.shape_cast %20 : vector<128xf32> to vector<1x128xf32>
    %22 = vector.broadcast %21 : vector<1x128xf32> to vector<8x128xf32>
    %23 = arith.addf %18, %22 : vector<8x128xf32>
    %cst_13 = arith.constant 0.000000e+00 : f32
    %24 = vector.broadcast %cst_13 : f32 to vector<8x128xf32>
    %25 = arith.cmpf ogt, %23, %24 : vector<8x128xf32>
    %cst_14 = arith.constant 2.000000e-01 : f32
    %26 = vector.broadcast %cst_14 : f32 to vector<8x128xf32>
    %27 = arith.mulf %26, %23 : vector<8x128xf32>
    %28 = arith.select %25, %23, %27 : vector<8x128xi1>, vector<8x128xf32>
    %29 = arith.truncf %28 : vector<8x128xf32> to vector<8x128xbf16>
    %c2 = arith.constant 2 : index
    %c0_15 = arith.constant 0 : index
    %c0_16 = arith.constant 0 : index
    %30 = vector.load %arg2[%c2, %c0_15, %c0_16] : memref<7x128x128xbf16, #tpu.memory_space<vmem>>, vector<1x128x128xbf16>
    %31 = vector.shape_cast %30 : vector<1x128x128xbf16> to vector<128x128xbf16>
    %cst_17 = arith.constant dense<0.000000e+00> : vector<8x128xf32>
    %32 = tpu.matmul %29, %31, %cst_17 {dimension_numbers = #tpu.dot_dimension_numbers<[1], [0], [0], [1], [0, 0, 1, 1], [], []>} : vector<8x128xbf16>, vector<128x128xbf16>, vector<8x128xf32> -> vector<8x128xf32>
    %c2_18 = arith.constant 2 : index
    %c0_19 = arith.constant 0 : index
    %33 = vector.load %arg3[%c2_18, %c0_19] : memref<7x128xf32, #tpu.memory_space<vmem>>, vector<1x128xf32>
    %34 = vector.shape_cast %33 : vector<1x128xf32> to vector<128xf32>
    %35 = vector.shape_cast %34 : vector<128xf32> to vector<1x128xf32>
    %36 = vector.broadcast %35 : vector<1x128xf32> to vector<8x128xf32>
    %37 = arith.addf %32, %36 : vector<8x128xf32>
    %cst_20 = arith.constant 0.000000e+00 : f32
    %38 = vector.broadcast %cst_20 : f32 to vector<8x128xf32>
    %39 = arith.cmpf ogt, %37, %38 : vector<8x128xf32>
    %cst_21 = arith.constant 2.000000e-01 : f32
    %40 = vector.broadcast %cst_21 : f32 to vector<8x128xf32>
    %41 = arith.mulf %40, %37 : vector<8x128xf32>
    %42 = arith.select %39, %37, %41 : vector<8x128xi1>, vector<8x128xf32>
    %43 = arith.truncf %42 : vector<8x128xf32> to vector<8x128xbf16>
    %c3 = arith.constant 3 : index
    %c0_22 = arith.constant 0 : index
    %c0_23 = arith.constant 0 : index
    %44 = vector.load %arg2[%c3, %c0_22, %c0_23] : memref<7x128x128xbf16, #tpu.memory_space<vmem>>, vector<1x128x128xbf16>
    %45 = vector.shape_cast %44 : vector<1x128x128xbf16> to vector<128x128xbf16>
    %cst_24 = arith.constant dense<0.000000e+00> : vector<8x128xf32>
    %46 = tpu.matmul %43, %45, %cst_24 {dimension_numbers = #tpu.dot_dimension_numbers<[1], [0], [0], [1], [0, 0, 1, 1], [], []>} : vector<8x128xbf16>, vector<128x128xbf16>, vector<8x128xf32> -> vector<8x128xf32>
    %c3_25 = arith.constant 3 : index
    %c0_26 = arith.constant 0 : index
    %47 = vector.load %arg3[%c3_25, %c0_26] : memref<7x128xf32, #tpu.memory_space<vmem>>, vector<1x128xf32>
    %48 = vector.shape_cast %47 : vector<1x128xf32> to vector<128xf32>
    %49 = vector.shape_cast %48 : vector<128xf32> to vector<1x128xf32>
    %50 = vector.broadcast %49 : vector<1x128xf32> to vector<8x128xf32>
    %51 = arith.addf %46, %50 : vector<8x128xf32>
    %cst_27 = arith.constant 0.000000e+00 : f32
    %52 = vector.broadcast %cst_27 : f32 to vector<8x128xf32>
    %53 = arith.cmpf ogt, %51, %52 : vector<8x128xf32>
    %cst_28 = arith.constant 2.000000e-01 : f32
    %54 = vector.broadcast %cst_28 : f32 to vector<8x128xf32>
    %55 = arith.mulf %54, %51 : vector<8x128xf32>
    %56 = arith.select %53, %51, %55 : vector<8x128xi1>, vector<8x128xf32>
    %57 = arith.truncf %56 : vector<8x128xf32> to vector<8x128xbf16>
    %c4 = arith.constant 4 : index
    %c0_29 = arith.constant 0 : index
    %c0_30 = arith.constant 0 : index
    %58 = vector.load %arg2[%c4, %c0_29, %c0_30] : memref<7x128x128xbf16, #tpu.memory_space<vmem>>, vector<1x128x128xbf16>
    %59 = vector.shape_cast %58 : vector<1x128x128xbf16> to vector<128x128xbf16>
    %cst_31 = arith.constant dense<0.000000e+00> : vector<8x128xf32>
    %60 = tpu.matmul %57, %59, %cst_31 {dimension_numbers = #tpu.dot_dimension_numbers<[1], [0], [0], [1], [0, 0, 1, 1], [], []>} : vector<8x128xbf16>, vector<128x128xbf16>, vector<8x128xf32> -> vector<8x128xf32>
    %c4_32 = arith.constant 4 : index
    %c0_33 = arith.constant 0 : index
    %61 = vector.load %arg3[%c4_32, %c0_33] : memref<7x128xf32, #tpu.memory_space<vmem>>, vector<1x128xf32>
    %62 = vector.shape_cast %61 : vector<1x128xf32> to vector<128xf32>
    %63 = vector.shape_cast %62 : vector<128xf32> to vector<1x128xf32>
    %64 = vector.broadcast %63 : vector<1x128xf32> to vector<8x128xf32>
    %65 = arith.addf %60, %64 : vector<8x128xf32>
    %cst_34 = arith.constant 0.000000e+00 : f32
    %66 = vector.broadcast %cst_34 : f32 to vector<8x128xf32>
    %67 = arith.cmpf ogt, %65, %66 : vector<8x128xf32>
    %cst_35 = arith.constant 2.000000e-01 : f32
    %68 = vector.broadcast %cst_35 : f32 to vector<8x128xf32>
    %69 = arith.mulf %68, %65 : vector<8x128xf32>
    %70 = arith.select %67, %65, %69 : vector<8x128xi1>, vector<8x128xf32>
    %71 = arith.truncf %70 : vector<8x128xf32> to vector<8x128xbf16>
    %c5 = arith.constant 5 : index
    %c0_36 = arith.constant 0 : index
    %c0_37 = arith.constant 0 : index
    %72 = vector.load %arg2[%c5, %c0_36, %c0_37] : memref<7x128x128xbf16, #tpu.memory_space<vmem>>, vector<1x128x128xbf16>
    %73 = vector.shape_cast %72 : vector<1x128x128xbf16> to vector<128x128xbf16>
    %cst_38 = arith.constant dense<0.000000e+00> : vector<8x128xf32>
    %74 = tpu.matmul %71, %73, %cst_38 {dimension_numbers = #tpu.dot_dimension_numbers<[1], [0], [0], [1], [0, 0, 1, 1], [], []>} : vector<8x128xbf16>, vector<128x128xbf16>, vector<8x128xf32> -> vector<8x128xf32>
    %c5_39 = arith.constant 5 : index
    %c0_40 = arith.constant 0 : index
    %75 = vector.load %arg3[%c5_39, %c0_40] : memref<7x128xf32, #tpu.memory_space<vmem>>, vector<1x128xf32>
    %76 = vector.shape_cast %75 : vector<1x128xf32> to vector<128xf32>
    %77 = vector.shape_cast %76 : vector<128xf32> to vector<1x128xf32>
    %78 = vector.broadcast %77 : vector<1x128xf32> to vector<8x128xf32>
    %79 = arith.addf %74, %78 : vector<8x128xf32>
    %cst_41 = arith.constant 0.000000e+00 : f32
    %80 = vector.broadcast %cst_41 : f32 to vector<8x128xf32>
    %81 = arith.cmpf ogt, %79, %80 : vector<8x128xf32>
    %cst_42 = arith.constant 2.000000e-01 : f32
    %82 = vector.broadcast %cst_42 : f32 to vector<8x128xf32>
    %83 = arith.mulf %82, %79 : vector<8x128xf32>
    %84 = arith.select %81, %79, %83 : vector<8x128xi1>, vector<8x128xf32>
    %85 = arith.truncf %84 : vector<8x128xf32> to vector<8x128xbf16>
    %c6 = arith.constant 6 : index
    %c0_43 = arith.constant 0 : index
    %c0_44 = arith.constant 0 : index
    %86 = vector.load %arg2[%c6, %c0_43, %c0_44] : memref<7x128x128xbf16, #tpu.memory_space<vmem>>, vector<1x128x128xbf16>
    %87 = vector.shape_cast %86 : vector<1x128x128xbf16> to vector<128x128xbf16>
    %cst_45 = arith.constant dense<0.000000e+00> : vector<8x128xf32>
    %88 = tpu.matmul %85, %87, %cst_45 {dimension_numbers = #tpu.dot_dimension_numbers<[1], [0], [0], [1], [0, 0, 1, 1], [], []>} : vector<8x128xbf16>, vector<128x128xbf16>, vector<8x128xf32> -> vector<8x128xf32>
    %c6_46 = arith.constant 6 : index
    %c0_47 = arith.constant 0 : index
    %89 = vector.load %arg3[%c6_46, %c0_47] : memref<7x128xf32, #tpu.memory_space<vmem>>, vector<1x128xf32>
    %90 = vector.shape_cast %89 : vector<1x128xf32> to vector<128xf32>
    %91 = vector.shape_cast %90 : vector<128xf32> to vector<1x128xf32>
    %92 = vector.broadcast %91 : vector<1x128xf32> to vector<8x128xf32>
    %93 = arith.addf %88, %92 : vector<8x128xf32>
    %94 = tpu.iota {dimensions = array<i32: 1>} : vector<8x128xi32>
    %c0_48 = arith.constant 0 : index
    %c0_49 = arith.constant 0 : index
    %95 = vector.load %arg4[%c0_48, %c0_49] : memref<8x1xi32, #tpu.memory_space<vmem>>, vector<8x1xi32>
    %96 = vector.broadcast %95 : vector<8x1xi32> to vector<8x128xi32>
    %97 = arith.cmpi eq, %94, %96 : vector<8x128xi32>
    %98 = arith.extui %97 : vector<8x128xi1> to vector<8x128xi32>
    %99 = arith.sitofp %98 : vector<8x128xi32> to vector<8x128xf32>
    %100 = arith.mulf %93, %99 : vector<8x128xf32>
    %cst_50 = arith.constant dense<0.000000e+00> : vector<8xf32>
    %101 = vector.multi_reduction <add>, %100, %cst_50 [1] : vector<8x128xf32> to vector<8xf32>
    %102 = vector.shape_cast %101 : vector<8xf32> to vector<8x1xf32>
    %c4_i32 = arith.constant 4 : i32
    %103 = vector.broadcast %c4_i32 : i32 to vector<8x128xi32>
    %104 = arith.cmpi slt, %94, %103 : vector<8x128xi32>
    %cst_51 = arith.constant -1.000000e+30 : f32
    %105 = vector.broadcast %cst_51 : f32 to vector<8x128xf32>
    %106 = arith.select %104, %93, %105 : vector<8x128xi1>, vector<8x128xf32>
    %cst_52 = arith.constant dense<0xFF800000> : vector<8xf32>
    %107 = vector.multi_reduction <maximumf>, %106, %cst_52 [1] : vector<8x128xf32> to vector<8xf32>
    %108 = vector.shape_cast %107 : vector<8xf32> to vector<8x1xf32>
    %109 = vector.broadcast %108 : vector<8x1xf32> to vector<8x128xf32>
    %110 = arith.subf %106, %109 : vector<8x128xf32>
    %111 = math.exp %110 : vector<8x128xf32>
    %cst_53 = arith.constant dense<0.000000e+00> : vector<8xf32>
    %112 = vector.multi_reduction <add>, %111, %cst_53 [1] : vector<8x128xf32> to vector<8xf32>
    %113 = vector.shape_cast %112 : vector<8xf32> to vector<8x1xf32>
    %114 = math.log %113 : vector<8x1xf32>
    %115 = arith.addf %108, %114 : vector<8x1xf32>
    %116 = tpu.iota {dimensions = array<i32: 0>} : vector<8x1xi32>
    %c8_i32 = arith.constant 8 : i32
    %117 = arith.muli %arg0, %c8_i32 : i32
    %118 = vector.broadcast %117 : i32 to vector<8x1xi32>
    %119 = arith.addi %116, %118 : vector<8x1xi32>
    %c8_i32_54 = arith.constant 8 : i32
    %120 = vector.broadcast %c8_i32_54 : i32 to vector<8x1xi32>
    %121 = arith.cmpi slt, %119, %120 : vector<8x1xi32>
    %122 = arith.subf %115, %102 : vector<8x1xf32>
    %cst_55 = arith.constant 0.000000e+00 : f32
    %123 = vector.broadcast %cst_55 : f32 to vector<8x1xf32>
    %124 = arith.select %121, %122, %123 : vector<8x1xi1>, vector<8x1xf32>
    %125 = vector.shape_cast %124 : vector<8x1xf32> to vector<1x8x1xf32>
    %cst_56 = arith.constant dense<0.000000e+00> : vector<1xf32>
    %126 = vector.multi_reduction <add>, %125, %cst_56 [1, 2] : vector<1x8x1xf32> to vector<1xf32>
    %127 = vector.shape_cast %126 : vector<1xf32> to vector<1x1x1xf32>
    %128 = vector.extract %127[0, 0, 0] : f32 from vector<1x1x1xf32>
    %c0_57 = arith.constant 0 : index
    %c0_58 = arith.constant 0 : index
    %129 = memref.load %arg5[%c0_57, %c0_58] : memref<1x1xf32, #tpu.memory_space<smem>>
    memref.store %128, %arg5[%c0_57, %c0_58] : memref<1x1xf32, #tpu.memory_space<smem>>
    return
  }
  func.func @transform_0(%arg0: i32) -> (i32, i32) {
    %c0_i32 = arith.constant 0 : i32
    %c0_i32_0 = arith.constant 0 : i32
    return %arg0, %c0_i32 : i32, i32
  }
  func.func @transform_1(%arg0: i32) -> (i32, i32, i32) {
    %c0_i32 = arith.constant 0 : i32
    %c0_i32_0 = arith.constant 0 : i32
    %c0_i32_1 = arith.constant 0 : i32
    %c0_i32_2 = arith.constant 0 : i32
    return %c0_i32, %c0_i32_0, %c0_i32_1 : i32, i32, i32
  }
  func.func @transform_2(%arg0: i32) -> (i32, i32) {
    %c0_i32 = arith.constant 0 : i32
    %c0_i32_0 = arith.constant 0 : i32
    %c0_i32_1 = arith.constant 0 : i32
    return %c0_i32, %c0_i32_0 : i32, i32
  }
  func.func @transform_3(%arg0: i32) -> (i32, i32) {
    %c0_i32 = arith.constant 0 : i32
    %c0_i32_0 = arith.constant 0 : i32
    return %arg0, %c0_i32 : i32, i32
  }
  func.func @transform_4(%arg0: i32) -> (i32, i32) {
    %c0_i32 = arith.constant 0 : i32
    %c0_i32_0 = arith.constant 0 : i32
    return %arg0, %c0_i32 : i32, i32
  }
}

</mosaic_0001>

<bundles_post_ra>
// kernel: discriminator_loss.1
= control target key start
LH: loop header
LB: loop body
LE: loop exit
PB: predicated region body
PF: predicated region fallthrough
CT: control target
= control target key end

     0   :  { %9 = vsyncpa [#allocation3], 0  ;;  %s1392_s0 = inlined_call_operand.vmem [shape: f32[8,128], index: 0, kind: input, shape index: {}]   ;;  %s1393_s1 = inlined_call_operand.hbm [shape: bf16[7,128,128], index: 1, kind: input, shape index: {}]   ;;  %s1394_s2 = inlined_call_operand.vmem [shape: f32[7,128], index: 2, kind: input, shape index: {}]   ;;  %s1395_s3 = inlined_call_operand.vmem [shape: s32[8,1], index: 3, kind: input, shape index: {}]   ;;  %s1396_s4 = inlined_call_operand.hbm [shape: f32[1,1], index: 4, kind: output, shape index: {}]  }
   0x1   :  { %10 = vsyncpa [#allocation4], 0  ;;  %s1256_s15 = smov [#allocation2]  }
   0x2   :  { %s18_s16 = sshll.u32 %s1256_s15, 4  ;;  %s19_s16 = int_to_ptr.vmem [resolvable:$true] %s18_s16 }
   0x3   :  { %s1232_s17 = scalar_lea.vmem %s19_s16, 7168  ;;  %p1237_p1 = scmp.lt.s32.totalorder %s19_s16, %s19_s16 }
   0x4   :  { %p1233_p0 = scmp.ne.s32.totalorder %s19_s16, %s1232_s17  ;;  %p1238_p2 = scmp.lt.s32.totalorder %s1232_s17, %s1232_s17 }
   0x6   :  { %p1239_p3 = por %p1238_p2, %p1237_p1 }
   0x8   :  { %p1240_p4 = pnand %p1239_p3, %p1233_p0 }
   0xa   :  { %1243 = shalt.err (!%p1240_p4)
}
   0xb   :  { %s1257_s18 = smov 64   ;;  %s1258_s19 = smov 4  }
   0xc   :  { %24 = dma.hbm_to_vmem [thread:$0]  %s1393_s1, 7168, %s19_s16, [#allocation3], %s1257_s18, %s1257_s18, %s1258_s19  }
   0xd   :  { %1252 = dma.done.wait [#allocation3], 7168  }
   0xe   :  { %1253 = vsyncadd [#allocation3], 4294960128  ;;  %v1259_v0 = vmov 0.0   ;;  %vm1260_vm0 = vmmov 0   ;;  %v1164_v1 = vld [vmem:[#allocation2 + $0x38] sm:$0xff]   ;;  %v1165_v2 = vld [vmem:[#allocation2 + $0x30] sm:$0xff]  }
   0xf   :  { %1014 = vmatprep.subr.bf16.mxu0 %v1259_v0  ;;  %1030 = vmatprep.mubr.msk.bf16.mxu0 %vm1260_vm0, %v1259_v0  ;;  %v1166_v3 = vld [vmem:[#allocation2 + $0x28] sm:$0xff]   ;;  %v1172_v4 = vld [vmem:[#allocation2 + $0x78] sm:$0xff]   ;;  %v1167_v5 = vld [vmem:[#allocation2 + $0x20] sm:$0xff]   ;;  %vm860_vm9 = vcmask 7168  }
  0x10   :  { %1034 = vmatprep.subr.bf16.mxu1 %v1259_v0  ;;  %1050 = vmatprep.mubr.msk.bf16.mxu1 %vm1260_vm0, %v1259_v0  ;;  %v1173_v6 = vld [vmem:[#allocation2 + $0x70] sm:$0xff]   ;;  %v1168_v7 = vld [vmem:[#allocation2 + $0x18] sm:$0xff]   ;;  %v1174_v8 = vld [vmem:[#allocation2 + $0x68] sm:$0xff]  }
  0x11   :  { %1015 = vmatpush3.bf16.msra.mxu0 %v1164_v1  ;;  %1035 = vmatpush3.bf16.msra.mxu1 %v1172_v4  ;;  %v1169_v9 = vld [vmem:[#allocation2 + $0x10] sm:$0xff]   ;;  %v1175_v10 = vld [vmem:[#allocation2 + $0x60] sm:$0xff]   ;;  %v1170_v11 = vld [vmem:[#allocation2 + $0x8] sm:$0xff]  }
  0x12   :  { %1016 = vmatprep.subr.bf16.mxu0 %v1259_v0  ;;  %1036 = vmatprep.subr.bf16.mxu1 %v1259_v0  ;;  %v1176_v12 = vld [vmem:[#allocation2 + $0x58] sm:$0xff]   ;;  %v1171_v13 = vld [vmem:[#allocation2] sm:$0xff]   ;;  %v1177_v15 = vld [vmem:[#allocation2 + $0x50] sm:$0xff]  }
  0x13   :  { %v33_v14 = vld [vmem:[%s1392_s0] sm:$0xff]  ;;  %v1178_v17 = vld [vmem:[#allocation2 + $0x48] sm:$0xff]   ;;  %v1180_v19 = vld [vmem:[#allocation2 + $0xb8] sm:$0xff]  }
  0x14   :  { %v34_v16 = vpack.c.bf16 %v33_v14, %v33_v14  ;;  %v1179_v18 = vld [vmem:[#allocation2 + $0x40] sm:$0xff]   ;;  %v1181_v20 = vld [vmem:[#allocation2 + $0xb0] sm:$0xff]   ;;  %v1182_v21 = vld [vmem:[#allocation2 + $0xa8] sm:$0xff]  }
  0x15   :  { %1017 = vmatpush3.bf16.msra.mxu0 %v1165_v2  ;;  %1037 = vmatpush3.bf16.msra.mxu1 %v1173_v6  ;;  %v1183_v22 = vld [vmem:[#allocation2 + $0xa0] sm:$0xff]   ;;  %v1184_v23 = vld [vmem:[#allocation2 + $0x98] sm:$0xff]   ;;  %v1185_v24 = vld [vmem:[#allocation2 + $0x90] sm:$0xff]  }
  0x16   :  { %1018 = vmatprep.subr.bf16.mxu0 %v1259_v0  ;;  %1038 = vmatprep.subr.bf16.mxu1 %v1259_v0  ;;  %v887_v25 = vld [vmem:[%s1394_s2] ss:$0 sm:$0xff]  ;;  %v1186_v34 = vld [vmem:[#allocation2 + $0x88] sm:$0xff]   ;;  %v1188_v36 = vld [vmem:[#allocation2 + $0xf8] sm:$0xff]  }
  0x17   :  { %v1187_v35 = vld [vmem:[#allocation2 + $0x80] sm:$0xff]   ;;  %v1189_v37 = vld [vmem:[#allocation2 + $0xf0] sm:$0xff]   ;;  %v1190_v38 = vld [vmem:[#allocation2 + $0xe8] sm:$0xff]  }
  0x18   :  { %v1191_v39 = vld [vmem:[#allocation2 + $0xe0] sm:$0xff]   ;;  %v1192_v40 = vld [vmem:[#allocation2 + $0xd8] sm:$0xff]   ;;  %v1193_v41 = vld [vmem:[#allocation2 + $0xd0] sm:$0xff]  }
  0x19   :  { %1019 = vmatpush3.bf16.msra.mxu0 %v1166_v3  ;;  %1039 = vmatpush3.bf16.msra.mxu1 %v1174_v8  ;;  %v896_v42 = vld [vmem:[%s1394_s2 + $0x1] ss:$0 sm:$0xff]  ;;  %v1194_v51 = vld [vmem:[#allocation2 + $0xc8] sm:$0xff]   ;;  %v1196_v53 = vld [vmem:[#allocation2 + $0x138] sm:$0xff]  }
  0x1a   :  { %1020 = vmatprep.subr.bf16.mxu0 %v1259_v0  ;;  %1040 = vmatprep.subr.bf16.mxu1 %v1259_v0  ;;  %v1195_v52 = vld [vmem:[#allocation2 + $0xc0] sm:$0xff]   ;;  %v1197_v54 = vld [vmem:[#allocation2 + $0x130] sm:$0xff]   ;;  %v1198_v55 = vld [vmem:[#allocation2 + $0x128] sm:$0xff]  }
  0x1b   :  { %v1199_v56 = vld [vmem:[#allocation2 + $0x120] sm:$0xff]   ;;  %v1200_v57 = vld [vmem:[#allocation2 + $0x118] sm:$0xff]   ;;  %v1201_v58 = vld [vmem:[#allocation2 + $0x110] sm:$0xff]  }
  0x1c   :  { %v905_v59 = vld [vmem:[%s1394_s2 + $0x2] ss:$0 sm:$0xff]  ;;  %v1205_v8 = vld [vmem:[#allocation2 + $0x170] sm:$0xff]  }
  0x1d   :  { %1021 = vmatpush3.bf16.msra.mxu0 %v1167_v5  ;;  %1041 = vmatpush3.bf16.msra.mxu1 %v1175_v10  ;;  %v1202_v5 = vld [vmem:[#allocation2 + $0x108] sm:$0xff]   ;;  %v1203_v6 = vld [vmem:[#allocation2 + $0x100] sm:$0xff]  }
  0x1e   :  { %1022 = vmatprep.subr.bf16.mxu0 %v1259_v0  ;;  %1042 = vmatprep.subr.bf16.mxu1 %v1259_v0  ;;  %v1207_v10 = vld [vmem:[#allocation2 + $0x160] sm:$0xff]  }
  0x21   :  { %1023 = vmatpush3.bf16.msra.mxu0 %v1168_v7  ;;  %1043 = vmatpush3.bf16.msra.mxu1 %v1176_v12  ;;  %v1204_v7 = vld [vmem:[#allocation2 + $0x178] sm:$0xff]   ;;  %v1209_v12 = vld [vmem:[#allocation2 + $0x150] sm:$0xff]  }
  0x22   :  { %1024 = vmatprep.subr.bf16.mxu0 %v1259_v0  ;;  %1044 = vmatprep.subr.bf16.mxu1 %v1259_v0 }
  0x25   :  { %1025 = vmatpush3.bf16.msra.mxu0 %v1169_v9  ;;  %1045 = vmatpush3.bf16.msra.mxu1 %v1177_v15  ;;  %v1206_v9 = vld [vmem:[#allocation2 + $0x168] sm:$0xff]  }
  0x26   :  { %1026 = vmatprep.subr.bf16.mxu0 %v1259_v0  ;;  %1046 = vmatprep.subr.bf16.mxu1 %v1259_v0 }
  0x29   :  { %1027 = vmatpush3.bf16.msra.mxu0 %v1170_v11  ;;  %1047 = vmatpush3.bf16.msra.mxu1 %v1178_v17  ;;  %v1208_v11 = vld [vmem:[#allocation2 + $0x158] sm:$0xff]  }
  0x2a   :  { %1028 = vmatprep.subr.bf16.mxu0 %v1259_v0  ;;  %1048 = vmatprep.subr.bf16.mxu1 %v1259_v0 }
  0x2d   :  { %1029 = vmatpush3.bf16.msra.mxu0 %v1171_v13  ;;  %1049 = vmatpush3.bf16.msra.mxu1 %v1179_v18  ;;  %v914_v13 = vld [vmem:[%s1394_s2 + $0x3] ss:$0 sm:$0xff] }
  0x2e   :  { %1054 = vmatprep.subr.bf16.mxu0 %v1259_v0  ;;  %1074 = vmatprep.subr.bf16.mxu1 %v1259_v0 }
  0x30   :  { %1031 = vmatmul.mubr.bf16.vlgmr.msra.gmra.mxu0 %v34_v16 }
  0x31   :  { %1070 = vmatprep.mubr.msk.bf16.mxu0 %vm1260_vm0, %v1259_v0  ;;  %1055 = vmatpush3.bf16.msra.mxu0 %v1180_v19 }
  0x32   :  { %1056 = vmatprep.subr.bf16.mxu0 %v1259_v0 }
  0x35   :  { %1057 = vmatpush3.bf16.msra.mxu0 %v1181_v20 }
  0x36   :  { %1058 = vmatprep.subr.bf16.mxu0 %v1259_v0 }
  0x39   :  { %1059 = vmatpush3.bf16.msra.mxu0 %v1182_v21 }
  0x3a   :  { %1060 = vmatprep.subr.bf16.mxu0 %v1259_v0 }
  0x3d   :  { %1061 = vmatpush3.bf16.msra.mxu0 %v1183_v22  ;;  %v1210_v22 = vld [vmem:[#allocation2 + $0x148] sm:$0xff]  }
  0x3e   :  { %1062 = vmatprep.subr.bf16.mxu0 %v1259_v0 }
  0x41   :  { %1063 = vmatpush3.bf16.msra.mxu0 %v1184_v23  ;;  %v1211_v23 = vld [vmem:[#allocation2 + $0x140] sm:$0xff]  }
  0x42   :  { %1064 = vmatprep.subr.bf16.mxu0 %v1259_v0 }
  0x45   :  { %1065 = vmatpush3.bf16.msra.mxu0 %v1185_v24  ;;  %v1212_v24 = vld [vmem:[#allocation2 + $0x1b8] sm:$0xff]  }
  0x46   :  { %1066 = vmatprep.subr.bf16.mxu0 %v1259_v0 }
  0x49   :  { %1067 = vmatpush3.bf16.msra.mxu0 %v1186_v34 }
  0x4a   :  { %1068 = vmatprep.subr.bf16.mxu0 %v1259_v0 }
  0x4d   :  { %1069 = vmatpush3.bf16.msra.mxu0 %v1187_v35 }
  0x4e   :  { %1094 = vmatprep.subr.bf16.mxu0 %v1259_v0 }
  0xf0   :  { %v138_v26 = vpop.f32.mrf.mxu0 }
  0xf1   :  { %v139_v27 = vadd.f32 %v887_v25, %v138_v26  ;;  %v1213_v25 = vld [vmem:[#allocation2 + $0x1b0] sm:$0xff]   ;;  %v1214_v26 = vld [vmem:[#allocation2 + $0x1a8] sm:$0xff]  }
  0xf2   :  { %v1032_v28 = vpop.f32.mrf.mxu0 }
  0xf3   :  { %vm144_vm1 = vcmp.gt.f32.partialorder %v139_v27, 0.0  ;;  %v145_v29 = vmul.f32 0.2, %v139_v27  ;;  %v1216_v28 = vld [vmem:[#allocation2 + $0x198] sm:$0xff]  }
  0xf4   :  { %v141_v30 = vpop.f32.mrf.mxu0 }
  0xf5   :  { %v146_v31 = vsel %vm144_vm1, %v139_v27, %v145_v29  ;;  %v1215_v27 = vld [vmem:[#allocation2 + $0x1a0] sm:$0xff]   ;;  %v1217_v29 = vld [vmem:[#allocation2 + $0x190] sm:$0xff]  }
  0xf6   :  { %v1033_v32 = vpop.f32.mrf.mxu0  ;;  %v147_v33 = vpack.c.bf16 %v146_v31, %v146_v31  ;;  %v923_v30 = vld [vmem:[%s1394_s2 + $0x4] ss:$0 sm:$0xff] }
  0xf8   :  { %1051 = vmatmul.mubr.bf16.vlgmr.msra.gmra.mxu1 %v147_v33 }
  0xf9   :  { %1090 = vmatprep.mubr.msk.bf16.mxu1 %vm1260_vm0, %v1259_v0  ;;  %1075 = vmatpush3.bf16.msra.mxu1 %v1188_v36 }
  0xfa   :  { %1076 = vmatprep.subr.bf16.mxu1 %v1259_v0 }
  0xfd   :  { %1077 = vmatpush3.bf16.msra.mxu1 %v1189_v37 }
  0xfe   :  { %1078 = vmatprep.subr.bf16.mxu1 %v1259_v0 }
 0x101   :  { %1079 = vmatpush3.bf16.msra.mxu1 %v1190_v38 }
 0x102   :  { %1080 = vmatprep.subr.bf16.mxu1 %v1259_v0 }
 0x105   :  { %1081 = vmatpush3.bf16.msra.mxu1 %v1191_v39  ;;  %v1218_v39 = vld [vmem:[#allocation2 + $0x188] sm:$0xff]  }
 0x106   :  { %1082 = vmatprep.subr.bf16.mxu1 %v1259_v0 }
 0x109   :  { %1083 = vmatpush3.bf16.msra.mxu1 %v1192_v40  ;;  %v1219_v40 = vld [vmem:[#allocation2 + $0x180] sm:$0xff]  }
 0x10a   :  { %1084 = vmatprep.subr.bf16.mxu1 %v1259_v0 }
 0x10d   :  { %1085 = vmatpush3.bf16.msra.mxu1 %v1193_v41  ;;  %v932_v41 = vld [vmem:[%s1394_s2 + $0x5] ss:$0 sm:$0xff] }
 0x10e   :  { %1086 = vmatprep.subr.bf16.mxu1 %v1259_v0 }
 0x111   :  { %1087 = vmatpush3.bf16.msra.mxu1 %v1194_v51  ;;  %v828_v51 = vlaneseq }
 0x112   :  { %1088 = vmatprep.subr.bf16.mxu1 %v1259_v0 }
 0x115   :  { %1089 = vmatpush3.bf16.msra.mxu1 %v1195_v52  ;;  %v829_v52 = vand.u32 127, %v828_v51 }
 0x116   :  { %1114 = vmatprep.subr.bf16.mxu1 %v1259_v0 }
 0x117   :  { %vm840_vm7 = vcmp.lt.s32.totalorder %v829_v52, 4 }
 0x1b8   :  { %v252_v43 = vpop.f32.mrf.mxu1 }
 0x1b9   :  { %v253_v44 = vadd.f32 %v896_v42, %v252_v43 }
 0x1ba   :  { %v1052_v45 = vpop.f32.mrf.mxu1 }
 0x1bb   :  { %vm258_vm2 = vcmp.gt.f32.partialorder %v253_v44, 0.0  ;;  %v259_v46 = vmul.f32 0.2, %v253_v44 }
 0x1bc   :  { %v255_v47 = vpop.f32.mrf.mxu1 }
 0x1bd   :  { %v260_v48 = vsel %vm258_vm2, %v253_v44, %v259_v46 }
 0x1be   :  { %v261_v49 = vpack.c.bf16 %v260_v48, %v260_v48  ;;  %v1053_v50 = vpop.f32.mrf.mxu1 }
 0x1bf   :  { %v1261_v50 = vmov 0  }
 0x1c0   :  { %1071 = vmatmul.mubr.bf16.vlgmr.msra.gmra.mxu0 %v261_v49  ;;  %1163 = vset.pattern.permute.xlu0 %v1261_v50 }
 0x1c1   :  { %1110 = vmatprep.mubr.msk.bf16.mxu0 %vm1260_vm0, %v1259_v0  ;;  %1095 = vmatpush3.bf16.msra.mxu0 %v1196_v53  ;;  %v941_v53 = vld [vmem:[%s1394_s2 + $0x6] ss:$0 sm:$0xff] }
 0x1c2   :  { %1096 = vmatprep.subr.bf16.mxu0 %v1259_v0 }
 0x1c5   :  { %1097 = vmatpush3.bf16.msra.mxu0 %v1197_v54 }
 0x1c6   :  { %1098 = vmatprep.subr.bf16.mxu0 %v1259_v0 }
 0x1c9   :  { %1099 = vmatpush3.bf16.msra.mxu0 %v1198_v55 }
 0x1ca   :  { %1100 = vmatprep.subr.bf16.mxu0 %v1259_v0 }
 0x1cd   :  { %1101 = vmatpush3.bf16.msra.mxu0 %v1199_v56 }
 0x1ce   :  { %1102 = vmatprep.subr.bf16.mxu0 %v1259_v0 }
 0x1d1   :  { %1103 = vmatpush3.bf16.msra.mxu0 %v1200_v57 }
 0x1d2   :  { %1104 = vmatprep.subr.bf16.mxu0 %v1259_v0 }
 0x1d5   :  { %1105 = vmatpush3.bf16.msra.mxu0 %v1201_v58 }
 0x1d6   :  { %1106 = vmatprep.subr.bf16.mxu0 %v1259_v0 }
 0x1d9   :  { %1107 = vmatpush3.bf16.msra.mxu0 %v1202_v5 }
 0x1da   :  { %1108 = vmatprep.subr.bf16.mxu0 %v1259_v0 }
 0x1dd   :  { %1109 = vmatpush3.bf16.msra.mxu0 %v1203_v6 }
 0x1de   :  { %1134 = vmatprep.subr.bf16.mxu0 %v1259_v0 }
 0x280   :  { %v366_v60 = vpop.f32.mrf.mxu0 }
 0x281   :  { %v367_v61 = vadd.f32 %v905_v59, %v366_v60  ;;  %v830_v60 = vld [vmem:[%s1395_s3] sm:$0xff]  ;;  %s1262_s3 = smov [#allocation5]  }
 0x282   :  { %v1072_v62 = vpop.f32.mrf.mxu0 }
 0x283   :  { %vm372_vm3 = vcmp.gt.f32.partialorder %v367_v61, 0.0  ;;  %v373_v63 = vmul.f32 0.2, %v367_v61 }
 0x284   :  { %v369_v1 = vpop.f32.mrf.mxu0 }
 0x285   :  { %v374_v2 = vsel %vm372_vm3, %v367_v61, %v373_v63 }
 0x286   :  { %v375_v3 = vpack.c.bf16 %v374_v2, %v374_v2  ;;  %v1073_v4 = vpop.f32.mrf.mxu0 }
 0x288   :  { %1091 = vmatmul.mubr.bf16.vlgmr.msra.gmra.mxu1 %v375_v3 }
 0x289   :  { %1130 = vmatprep.mubr.msk.bf16.mxu1 %vm1260_vm0, %v1259_v0  ;;  %1115 = vmatpush3.bf16.msra.mxu1 %v1204_v7 }
 0x28a   :  { %1116 = vmatprep.subr.bf16.mxu1 %v1259_v0 }
 0x28d   :  { %1117 = vmatpush3.bf16.msra.mxu1 %v1205_v8 }
 0x28e   :  { %1118 = vmatprep.subr.bf16.mxu1 %v1259_v0 }
 0x291   :  { %1119 = vmatpush3.bf16.msra.mxu1 %v1206_v9 }
 0x292   :  { %1120 = vmatprep.subr.bf16.mxu1 %v1259_v0 }
 0x295   :  { %1121 = vmatpush3.bf16.msra.mxu1 %v1207_v10 }
 0x296   :  { %1122 = vmatprep.subr.bf16.mxu1 %v1259_v0 }
 0x299   :  { %1123 = vmatpush3.bf16.msra.mxu1 %v1208_v11 }
 0x29a   :  { %1124 = vmatprep.subr.bf16.mxu1 %v1259_v0 }
 0x29d   :  { %1125 = vmatpush3.bf16.msra.mxu1 %v1209_v12 }
 0x29e   :  { %1126 = vmatprep.subr.bf16.mxu1 %v1259_v0 }
 0x2a1   :  { %1127 = vmatpush3.bf16.msra.mxu1 %v1210_v22 }
 0x2a2   :  { %1128 = vmatprep.subr.bf16.mxu1 %v1259_v0 }
 0x2a5   :  { %1129 = vmatpush3.bf16.msra.mxu1 %v1211_v23 }
 0x348   :  { %v480_v14 = vpop.f32.mrf.mxu1 }
 0x349   :  { %v481_v15 = vadd.f32 %v914_v13, %v480_v14 }
 0x34a   :  { %v1092_v16 = vpop.f32.mrf.mxu1 }
 0x34b   :  { %vm486_vm4 = vcmp.gt.f32.partialorder %v481_v15, 0.0  ;;  %v487_v17 = vmul.f32 0.2, %v481_v15 }
 0x34c   :  { %v483_v18 = vpop.f32.mrf.mxu1 }
 0x34d   :  { %v488_v19 = vsel %vm486_vm4, %v481_v15, %v487_v17 }
 0x34e   :  { %v489_v20 = vpack.c.bf16 %v488_v19, %v488_v19  ;;  %v1093_v21 = vpop.f32.mrf.mxu1 }
 0x350   :  { %1111 = vmatmul.mubr.bf16.vlgmr.msra.gmra.mxu0 %v489_v20 }
 0x351   :  { %1150 = vmatprep.mubr.msk.bf16.mxu0 %vm1260_vm0, %v1259_v0  ;;  %1135 = vmatpush3.bf16.msra.mxu0 %v1212_v24 }
 0x352   :  { %1136 = vmatprep.subr.bf16.mxu0 %v1259_v0 }
 0x355   :  { %1137 = vmatpush3.bf16.msra.mxu0 %v1213_v25 }
 0x356   :  { %1138 = vmatprep.subr.bf16.mxu0 %v1259_v0 }
 0x359   :  { %1139 = vmatpush3.bf16.msra.mxu0 %v1214_v26 }
 0x35a   :  { %1140 = vmatprep.subr.bf16.mxu0 %v1259_v0 }
 0x35d   :  { %1141 = vmatpush3.bf16.msra.mxu0 %v1215_v27 }
 0x35e   :  { %1142 = vmatprep.subr.bf16.mxu0 %v1259_v0 }
 0x361   :  { %1143 = vmatpush3.bf16.msra.mxu0 %v1216_v28 }
 0x362   :  { %1144 = vmatprep.subr.bf16.mxu0 %v1259_v0 }
 0x365   :  { %1145 = vmatpush3.bf16.msra.mxu0 %v1217_v29 }
 0x366   :  { %1146 = vmatprep.subr.bf16.mxu0 %v1259_v0 }
 0x369   :  { %1147 = vmatpush3.bf16.msra.mxu0 %v1218_v39 }
 0x36a   :  { %1148 = vmatprep.subr.bf16.mxu0 %v1259_v0 }
 0x36d   :  { %1149 = vmatpush3.bf16.msra.mxu0 %v1219_v40 }
 0x410   :  { %v594_v31 = vpop.f32.mrf.mxu0 }
 0x411   :  { %v595_v32 = vadd.f32 %v923_v30, %v594_v31 }
 0x412   :  { %v1112_v33 = vpop.f32.mrf.mxu0 }
 0x413   :  { %vm600_vm5 = vcmp.gt.f32.partialorder %v595_v32, 0.0  ;;  %v601_v34 = vmul.f32 0.2, %v595_v32 }
 0x414   :  { %v597_v35 = vpop.f32.mrf.mxu0 }
 0x415   :  { %v602_v36 = vsel %vm600_vm5, %v595_v32, %v601_v34 }
 0x416   :  { %v603_v37 = vpack.c.bf16 %v602_v36, %v602_v36  ;;  %v1113_v38 = vpop.f32.mrf.mxu0 }
 0x418   :  { %1131 = vmatmul.mubr.bf16.vlgmr.msra.gmra.mxu1 %v603_v37 }
 0x4d8   :  { %v708_v42 = vpop.f32.mrf.mxu1 }
 0x4d9   :  { %v709_v43 = vadd.f32 %v932_v41, %v708_v42 }
 0x4da   :  { %v1132_v44 = vpop.f32.mrf.mxu1 }
 0x4db   :  { %vm714_vm6 = vcmp.gt.f32.partialorder %v709_v43, 0.0  ;;  %v715_v45 = vmul.f32 0.2, %v709_v43 }
 0x4dc   :  { %v711_v46 = vpop.f32.mrf.mxu1 }
 0x4dd   :  { %v716_v47 = vsel %vm714_vm6, %v709_v43, %v715_v45 }
 0x4de   :  { %v717_v48 = vpack.c.bf16 %v716_v47, %v716_v47  ;;  %v1133_v49 = vpop.f32.mrf.mxu1 }
 0x4e0   :  { %1151 = vmatmul.mubr.bf16.vlgmr.msra.gmra.mxu0 %v717_v48 }
 0x5a0   :  { %v822_v54 = vpop.f32.mrf.mxu0 }
 0x5a1   :  { %v823_v55 = vadd.f32 %v941_v53, %v822_v54 }
 0x5a2   :  { %v1152_v56 = vpop.f32.mrf.mxu0 }
 0x5a3   :  { %v841_v57 = vsel %vm840_vm7, %v823_v55, -1e+30 }
 0x5a4   :  { %842 = vmax.xlane.f32.xlu0 %v841_v57  ;;  %v825_v58 = vpop.f32.mrf.mxu0 }
 0x5a6   :  { %v1153_v59 = vpop.f32.mrf.mxu0 }
 0x5ba   :  { %832 = vperm.xlu0 %1163, %v830_v60  }
 0x62d   :  { %v843_v61 = vpop.xlane.xlu0 %842 }
 0x62e   :  { %v844_v62 = vsub.f32 %v841_v57, %v843_v61 }
 0x630   :  { %v845_v63 = vmul.f32 1.442695, %v844_v62 }
 0x632   :  { %1220 = vpow2.f32 %v845_v63 }
 0x635   :  { %v833_v1 = vpop.permute.xlu0 %832 }
 0x636   :  { %vm834_vm8 = vcmp.eq.s32.totalorder %v829_v52, %v833_v1 }
 0x637   :  { %v950_v3 = vsel %vm834_vm8, 1.0, %v1259_v0 }
 0x638   :  { %v837_v4 = vmul.f32 %v950_v3, %v823_v55 }
 0x63f   :  { %v1221_v2 = vpop.eup %1220 }
 0x640   :  { %847 = vadd.xlane.f32.xlu1 %v1221_v2 }
 0x644   :  { %838 = vadd.xlane.f32.xlu1 %v837_v4 }
 0x6c9   :  { %v848_v5 = vpop.xlane.xlu1 %847 }
 0x6ca   :  { %1222 = vlog2.f32 %v848_v5 }
 0x6cd   :  { %v839_v9 = vpop.xlane.xlu1 %838 }
 0x6d7   :  { %v1223_v6 = vpop.eup %1222 }
 0x6d8   :  { %v850_v7 = vmul.f32 0.6931472, %v1223_v6 }
 0x6da   :  { %v851_v8 = vadd.f32 %v850_v7, %v843_v61 }
 0x6dc   :  { %v858_v10 = vsub.f32 %v851_v8, %v839_v9 }
 0x6de   :  { %v861_v11 = vsel %vm860_vm9, %v858_v10, 0.0 }
 0x6df   :  { %862 = vadd.xlane.f32.xlu1 %v861_v11 }
 0x768   :  { %v863_v12 = vpop.xlane.xlu1 %862 }
 0x769   :  { %v864_v13 = vrot.slane %v863_v12, 4 }
 0x76b   :  { %v865_v14 = vadd.f32 %v864_v13, %v863_v12 }
 0x76d   :  { %v866_v15 = vrot.slane %v865_v14, 2 }
 0x76f   :  { %v867_v16 = vadd.f32 %v866_v15, %v865_v14 }
 0x771   :  { %v868_v17 = vrot.slane %v867_v16, 1 }
 0x773   :  { %v869_v0 = vadd.f32 %v868_v17, %v867_v16 }
 0x775   :  { %1154 = vpush %v869_v0 }
 0x7a6   :  { %s1155_s2 = spop %1154 }
 0x7a7   :  { %872 = sst [smem:[#allocation5]] %s1155_s2 }
 0x7a8   :  { %880 = dma.smem_to_hbm %s1262_s3, 16, %s1396_s4, [#allocation4]  }
 0x7a9   :  { %1254 = dma.done.wait [#allocation4], 16  }
 0x7aa   :  { %1255 = vsyncadd [#allocation4], 4294967280 }
 0x7ab   :  { %884 = sfence }
 0x7ac   :  { %885 = vsyncpa [#allocation3], 1 }
 0x7ad   :  { %886 = vsyncpa [#allocation4], 1 }

</bundles_post_ra>
